<compile_context>
chip_gen: v5e
topology: v5e:2x2
jax: 0.10.0
libtpu: 0.0.40
codegen_flags: <defaults>
</compile_context>

<pallas_src>
import functools

import jax
import jax.numpy as jnp
from jax.experimental import pallas as pl
from jax.experimental.pallas import tpu as pltpu


_NEG_BIG = -1e30  # big-negative filler for the segmented max (avoids inf literals)


def _pick_batch_tile(batch):
    """Largest power-of-two row tile (multiple of 8) that divides the batch."""
    for tb in (1024, 512, 256, 128, 64, 32, 16, 8):
        if batch % tb == 0:
            return tb
    return batch  # tiny / odd batch: a single whole-batch block


# ----------------------------------------------------------------------------
# Kernels
# ----------------------------------------------------------------------------
def _fused_concat_kernel(g_ref, d_ref, wgp_ref, wdp_ref, b_ref, eg_ref, ed_ref,
                         out_ref, *, inv_temp, fg):
    """concat=True branch, fully fused.

    out[:, :Fg] = gene * softmax((gene @ Wg.T + bg) * inv_temp)
    out[:, Fg:] = drug * softmax((drug @ Wd.T + bd) * inv_temp)

    wgp/wdp are zero-padded to the full output width, eg/ed are [I|0]/[0|I]
    selection matrices, so the whole kernel runs at full lane width and finishes
    with a single full-block store (no concat, no sub-slice stores).
    """
    g = g_ref[...]
    d = d_ref[...]

    # Both linear layers as one full-width slab: cols [0:Fg] = gene branch, rest = drug.
    z = (jnp.dot(g, wgp_ref[...], preferred_element_type=jnp.float32)
         + jnp.dot(d, wdp_ref[...], preferred_element_type=jnp.float32)
         + b_ref[...]) * inv_temp

    tb, ftot = z.shape
    col = jax.lax.broadcasted_iota(jnp.int32, (tb, ftot), 1)
    is_gene = col < fg

    # Segmented (per-branch), numerically stable softmax.
    m_g = jnp.max(jnp.where(is_gene, z, _NEG_BIG), axis=-1, keepdims=True)
    m_d = jnp.max(jnp.where(is_gene, _NEG_BIG, z), axis=-1, keepdims=True)
    e = jnp.exp(z - jnp.where(is_gene, m_g, m_d))
    s_g = jnp.sum(jnp.where(is_gene, e, 0.0), axis=-1, keepdims=True)
    s_d = jnp.sum(jnp.where(is_gene, 0.0, e), axis=-1, keepdims=True)
    attn = e * jnp.where(is_gene, pl.reciprocal(s_g), pl.reciprocal(s_d))

    # x_cat = [gene | drug] built with exact identity-selection matmuls.
    x_cat = (jnp.dot(g, eg_ref[...], preferred_element_type=jnp.float32)
             + jnp.dot(d, ed_ref[...], preferred_element_type=jnp.float32))

    out_ref[...] = (x_cat * attn).astype(out_ref.dtype)


def _fused_no_concat_kernel(g_ref, d_ref, we_ref, be_ref, wg_ref, bg_ref,
                            wd_ref, bd_ref, out_ref, *, inv_temp):
    """concat=False branch, fully fused: embed -> two attentions -> gated combine."""
    g = g_ref[...]
    d = d_ref[...]

    gp = jnp.dot(g, we_ref[...], preferred_element_type=jnp.float32) + be_ref[...]

    def _softmax(z):
        m = jnp.max(z, axis=-1, keepdims=True)
        e = jnp.exp(z - m)
        return e * pl.reciprocal(jnp.sum(e, axis=-1, keepdims=True))

    ag = _softmax((jnp.dot(gp, wg_ref[...], preferred_element_type=jnp.float32)
                   + bg_ref[...]) * inv_temp)
    ad = _softmax((jnp.dot(d, wd_ref[...], preferred_element_type=jnp.float32)
                   + bd_ref[...]) * inv_temp)

    # gene_p*(ag/s) + drug*(ad/s) == (gene_p*ag + drug*ad) * (1/s)
    inv_sum = pl.reciprocal(ag + ad)
    out_ref[...] = ((gp * ag + d * ad) * inv_sum).astype(out_ref.dtype)


# ----------------------------------------------------------------------------
# Module-equivalent wrapper
# ----------------------------------------------------------------------------
class SelfAttentionFunctionPallas:
    """JAX/Pallas port of SelfAttentionFunction. dropout=0.0 (identity) as in the module."""

    def __init__(self, gene_embed_size, drug_embed_size, temperature=1.0,
                 dropout=0.0, concat=True, key=None):
        assert dropout == 0.0  # Dropout(p=0.0) is identity
        if key is None:
            key = jax.random.PRNGKey(0)

        self.gene_embed_size = gene_embed_size
        self.drug_embed_size = drug_embed_size
        self.temperature = float(temperature)
        self.inv_temperature = 1.0 / float(temperature)
        self.concat = concat

        ks = jax.random.split(key, 6)

        def init_linear(kw, kb, fan_in, fan_out):
            bound = 1.0 / float(fan_in) ** 0.5
            w = jax.random.uniform(kw, (fan_out, fan_in), jnp.float32, -bound, bound)
            b = jax.random.uniform(kb, (fan_out,), jnp.float32, -bound, bound)
            return w, b

        Fg, Fd = gene_embed_size, drug_embed_size

        if concat:
            self.gene_w, self.gene_b = init_linear(ks[0], ks[1], Fg, Fg)
            self.drug_w, self.drug_b = init_linear(ks[2], ks[3], Fd, Fd)
            Ftot = Fg + Fd
            # One-time packing for the fused kernel (hoisted out of the forward pass).
            zg = jnp.zeros((Fg, Fd), jnp.float32)
            zd = jnp.zeros((Fd, Fg), jnp.float32)
            self._wg_pad = jnp.concatenate([self.gene_w.T, zg], axis=1)      # (Fg, Ftot)
            self._wd_pad = jnp.concatenate([zd, self.drug_w.T], axis=1)      # (Fd, Ftot)
            self._b_cat = jnp.concatenate([self.gene_b, self.drug_b]).reshape(1, Ftot)
            self._eg = jnp.concatenate([jnp.eye(Fg, dtype=jnp.float32), zg], axis=1)
            self._ed = jnp.concatenate([zd, jnp.eye(Fd, dtype=jnp.float32)], axis=1)
        else:
            self.embed_w, self.embed_b = init_linear(ks[4], ks[5], Fg, Fd)
            self.gene_w, self.gene_b = init_linear(ks[0], ks[1], Fd, Fd)
            self.drug_w, self.drug_b = init_linear(ks[2], ks[3], Fd, Fd)
            # Pre-transposed weights / 2-D biases (done once at init).
            self._we_t = self.embed_w.T            # (Fg, Fd)
            self._be2 = self.embed_b.reshape(1, Fd)
            self._wg_t = self.gene_w.T             # (Fd, Fd)
            self._bg2 = self.gene_b.reshape(1, Fd)
            self._wd_t = self.drug_w.T             # (Fd, Fd)
            self._bd2 = self.drug_b.reshape(1, Fd)

    def __call__(self, gene, drug):
        B = gene.shape[0]
        Fg, Fd = self.gene_embed_size, self.drug_embed_size
        tb = _pick_batch_tile(B)
        grid = (B // tb,)
        cparams = pltpu.CompilerParams(dimension_semantics=("parallel",))

        if self.concat:
            Ftot = Fg + Fd
            kernel = functools.partial(_fused_concat_kernel,
                                       inv_temp=self.inv_temperature, fg=Fg)
            return pl.pallas_call(
                kernel,
                grid=grid,
                out_shape=jax.ShapeDtypeStruct((B, Ftot), gene.dtype),
                in_specs=[
                    pl.BlockSpec((tb, Fg), lambda i: (i, 0)),     # gene rows
                    pl.BlockSpec((tb, Fd), lambda i: (i, 0)),     # drug rows
                    pl.BlockSpec((Fg, Ftot), lambda i: (0, 0)),   # padded gene weight
                    pl.BlockSpec((Fd, Ftot), lambda i: (0, 0)),   # padded drug weight
                    pl.BlockSpec((1, Ftot), lambda i: (0, 0)),    # concatenated bias
                    pl.BlockSpec((Fg, Ftot), lambda i: (0, 0)),   # [I | 0]
                    pl.BlockSpec((Fd, Ftot), lambda i: (0, 0)),   # [0 | I]
                ],
                out_specs=pl.BlockSpec((tb, Ftot), lambda i: (i, 0)),
                compiler_params=cparams,
            )(gene, drug, self._wg_pad, self._wd_pad, self._b_cat,
              self._eg, self._ed)
        else:
            kernel = functools.partial(_fused_no_concat_kernel,
                                       inv_temp=self.inv_temperature)
            return pl.pallas_call(
                kernel,
                grid=grid,
                out_shape=jax.ShapeDtypeStruct((B, Fd), gene.dtype),
                in_specs=[
                    pl.BlockSpec((tb, Fg), lambda i: (i, 0)),   # gene rows
                    pl.BlockSpec((tb, Fd), lambda i: (i, 0)),   # drug rows
                    pl.BlockSpec((Fg, Fd), lambda i: (0, 0)),   # embed weight^T
                    pl.BlockSpec((1, Fd), lambda i: (0, 0)),    # embed bias
                    pl.BlockSpec((Fd, Fd), lambda i: (0, 0)),   # gene attn weight^T
                    pl.BlockSpec((1, Fd), lambda i: (0, 0)),    # gene attn bias
                    pl.BlockSpec((Fd, Fd), lambda i: (0, 0)),   # drug attn weight^T
                    pl.BlockSpec((1, Fd), lambda i: (0, 0)),    # drug attn bias
                ],
                out_specs=pl.BlockSpec((tb, Fd), lambda i: (i, 0)),
                compiler_params=cparams,
            )(gene, drug, self._we_t, self._be2, self._wg_t, self._bg2,
              self._wd_t, self._bd2)


# ----------------------------------------------------------------------------
# Pure-JAX reference (mirrors the PyTorch forward exactly)
# ----------------------------------------------------------------------------
def reference_forward(mod, gene, drug):
    hp = jax.lax.Precision.HIGHEST

    def dense_attn(x, w, b):
        z = (jnp.dot(x, w.T, precision=hp) + b) / mod.temperature
        z = z - jnp.max(z, axis=-1, keepdims=True)
        e = jnp.exp(z)
        return e / jnp.sum(e, axis=-1, keepdims=True)

    if mod.concat:
        ag = dense_attn(gene, mod.gene_w, mod.gene_b)
        ad = dense_attn(drug, mod.drug_w, mod.drug_b)
        return jnp.concatenate([gene * ag, drug * ad], axis=1)
    else:
        gene_p = jnp.dot(gene, mod.embed_w.T, precision=hp) + mod.embed_b
        ag = dense_attn(gene_p, mod.gene_w, mod.gene_b)
        ad = dense_attn(drug, mod.drug_w, mod.drug_b)
        s = ag + ad
        return gene_p * (ag / s) + drug * (ad / s)


if __name__ == "__main__":
    key = jax.random.PRNGKey(0)
    k_gene, k_drug, k_params = jax.random.split(key, 3)

    batch = 4
    gene_embed_size = 32
    drug_embed_size = 48
    temperature = 0.8

    gene = jax.random.normal(k_gene, (batch, gene_embed_size), jnp.float32)
    drug = jax.random.normal(k_drug, (batch, drug_embed_size), jnp.float32)

    ok = True
    for concat in (True, False):
        mod = SelfAttentionFunctionPallas(gene_embed_size, drug_embed_size,
                                          temperature=temperature, dropout=0.0,
                                          concat=concat, key=k_params)
        out = jax.block_until_ready(mod(gene, drug))
        ref = reference_forward(mod, gene, drug)
        if out.shape != ref.shape:
            ok = False
        elif not jnp.allclose(out, ref, atol=1e-4, rtol=1e-4):
            ok = False

    print("KERNEL_OK" if ok else "KERNEL_MISMATCH")
</pallas_src>

<mosaic_0001>
module attributes {stable_mosaic.version = 11 : i64} {
  func.func @_fused_concat_kernel(%arg0: i32, %arg1: memref<4x32xf32, #tpu.memory_space<vmem>>, %arg2: memref<4x48xf32, #tpu.memory_space<vmem>>, %arg3: memref<32x80xf32, #tpu.memory_space<vmem>>, %arg4: memref<48x80xf32, #tpu.memory_space<vmem>>, %arg5: memref<1x80xf32, #tpu.memory_space<vmem>>, %arg6: memref<32x80xf32, #tpu.memory_space<vmem>>, %arg7: memref<48x80xf32, #tpu.memory_space<vmem>>, %arg8: memref<4x80xf32, #tpu.memory_space<vmem>>) attributes {dimension_semantics = [#tpu.dimension_semantics<parallel>], iteration_bounds = array<i64: 1>, scalar_prefetch = 0 : i64, scratch_operands = 0 : i64, tpu.core_type = #tpu.core_type<tc>, window_params = [{transform_indices = @transform_0, window_bounds = array<i64: 4, 32>}, {transform_indices = @transform_1, window_bounds = array<i64: 4, 48>}, {pipeline_mode = #tpu.pipeline_mode<synchronous>, transform_indices = @transform_2, window_bounds = array<i64: 32, 80>}, {pipeline_mode = #tpu.pipeline_mode<synchronous>, transform_indices = @transform_3, window_bounds = array<i64: 48, 80>}, {pipeline_mode = #tpu.pipeline_mode<synchronous>, transform_indices = @transform_4, window_bounds = array<i64: 1, 80>}, {pipeline_mode = #tpu.pipeline_mode<synchronous>, transform_indices = @transform_5, window_bounds = array<i64: 32, 80>}, {pipeline_mode = #tpu.pipeline_mode<synchronous>, transform_indices = @transform_6, window_bounds = array<i64: 48, 80>}, {transform_indices = @transform_7, window_bounds = array<i64: 4, 80>}]} {
    %c0 = arith.constant 0 : index
    %c0_0 = arith.constant 0 : index
    %0 = vector.load %arg1[%c0, %c0_0] : memref<4x32xf32, #tpu.memory_space<vmem>>, vector<4x32xf32>
    %c0_1 = arith.constant 0 : index
    %c0_2 = arith.constant 0 : index
    %1 = vector.load %arg2[%c0_1, %c0_2] : memref<4x48xf32, #tpu.memory_space<vmem>>, vector<4x48xf32>
    %c0_3 = arith.constant 0 : index
    %c0_4 = arith.constant 0 : index
    %2 = vector.load %arg3[%c0_3, %c0_4] : memref<32x80xf32, #tpu.memory_space<vmem>>, vector<32x80xf32>
    %cst = arith.constant dense<0.000000e+00> : vector<4x80xf32>
    %3 = tpu.matmul %0, %2, %cst {dimension_numbers = #tpu.dot_dimension_numbers<[1], [0], [0], [1], [0, 0, 1, 1], [], []>} : vector<4x32xf32>, vector<32x80xf32>, vector<4x80xf32> -> vector<4x80xf32>
    %c0_5 = arith.constant 0 : index
    %c0_6 = arith.constant 0 : index
    %4 = vector.load %arg4[%c0_5, %c0_6] : memref<48x80xf32, #tpu.memory_space<vmem>>, vector<48x80xf32>
    %cst_7 = arith.constant dense<0.000000e+00> : vector<4x80xf32>
    %5 = tpu.matmul %1, %4, %cst_7 {dimension_numbers = #tpu.dot_dimension_numbers<[1], [0], [0], [1], [0, 0, 1, 1], [], []>} : vector<4x48xf32>, vector<48x80xf32>, vector<4x80xf32> -> vector<4x80xf32>
    %6 = arith.addf %3, %5 : vector<4x80xf32>
    %c0_8 = arith.constant 0 : index
    %c0_9 = arith.constant 0 : index
    %7 = vector.load %arg5[%c0_8, %c0_9] : memref<1x80xf32, #tpu.memory_space<vmem>>, vector<1x80xf32>
    %8 = vector.broadcast %7 : vector<1x80xf32> to vector<4x80xf32>
    %9 = arith.addf %6, %8 : vector<4x80xf32>
    %cst_10 = arith.constant 1.250000e+00 : f32
    %10 = vector.broadcast %cst_10 : f32 to vector<4x80xf32>
    %11 = arith.mulf %9, %10 : vector<4x80xf32>
    %12 = tpu.iota {dimensions = array<i32: 1>} : vector<4x80xi32>
    %c32_i32 = arith.constant 32 : i32
    %13 = vector.broadcast %c32_i32 : i32 to vector<4x80xi32>
    %14 = arith.cmpi slt, %12, %13 : vector<4x80xi32>
    %cst_11 = arith.constant -1.000000e+30 : f32
    %15 = vector.broadcast %cst_11 : f32 to vector<4x80xf32>
    %16 = arith.select %14, %11, %15 : vector<4x80xi1>, vector<4x80xf32>
    %cst_12 = arith.constant dense<0xFF800000> : vector<4xf32>
    %17 = vector.multi_reduction <maximumf>, %16, %cst_12 [1] : vector<4x80xf32> to vector<4xf32>
    %18 = vector.shape_cast %17 : vector<4xf32> to vector<4x1xf32>
    %cst_13 = arith.constant -1.000000e+30 : f32
    %19 = vector.broadcast %cst_13 : f32 to vector<4x80xf32>
    %20 = arith.select %14, %19, %11 : vector<4x80xi1>, vector<4x80xf32>
    %cst_14 = arith.constant dense<0xFF800000> : vector<4xf32>
    %21 = vector.multi_reduction <maximumf>, %20, %cst_14 [1] : vector<4x80xf32> to vector<4xf32>
    %22 = vector.shape_cast %21 : vector<4xf32> to vector<4x1xf32>
    %23 = vector.shape_cast %18 : vector<4x1xf32> to vector<4x1xf32>
    %24 = vector.broadcast %23 : vector<4x1xf32> to vector<4x80xf32>
    %25 = vector.shape_cast %22 : vector<4x1xf32> to vector<4x1xf32>
    %26 = vector.broadcast %25 : vector<4x1xf32> to vector<4x80xf32>
    %27 = arith.select %14, %24, %26 : vector<4x80xi1>, vector<4x80xf32>
    %28 = arith.subf %11, %27 : vector<4x80xf32>
    %29 = math.exp %28 : vector<4x80xf32>
    %cst_15 = arith.constant 0.000000e+00 : f32
    %30 = vector.broadcast %cst_15 : f32 to vector<4x80xf32>
    %31 = arith.select %14, %29, %30 : vector<4x80xi1>, vector<4x80xf32>
    %cst_16 = arith.constant dense<0.000000e+00> : vector<4xf32>
    %32 = vector.multi_reduction <add>, %31, %cst_16 [1] : vector<4x80xf32> to vector<4xf32>
    %33 = vector.shape_cast %32 : vector<4xf32> to vector<4x1xf32>
    %cst_17 = arith.constant 0.000000e+00 : f32
    %34 = vector.broadcast %cst_17 : f32 to vector<4x80xf32>
    %35 = arith.select %14, %34, %29 : vector<4x80xi1>, vector<4x80xf32>
    %cst_18 = arith.constant dense<0.000000e+00> : vector<4xf32>
    %36 = vector.multi_reduction <add>, %35, %cst_18 [1] : vector<4x80xf32> to vector<4xf32>
    %37 = vector.shape_cast %36 : vector<4xf32> to vector<4x1xf32>
    %38 = tpu.reciprocal %33 : vector<4x1xf32> -> vector<4x1xf32>
    %39 = tpu.reciprocal %37 : vector<4x1xf32> -> vector<4x1xf32>
    %40 = vector.shape_cast %38 : vector<4x1xf32> to vector<4x1xf32>
    %41 = vector.broadcast %40 : vector<4x1xf32> to vector<4x80xf32>
    %42 = vector.shape_cast %39 : vector<4x1xf32> to vector<4x1xf32>
    %43 = vector.broadcast %42 : vector<4x1xf32> to vector<4x80xf32>
    %44 = arith.select %14, %41, %43 : vector<4x80xi1>, vector<4x80xf32>
    %45 = arith.mulf %29, %44 : vector<4x80xf32>
    %c0_19 = arith.constant 0 : index
    %c0_20 = arith.constant 0 : index
    %46 = vector.load %arg6[%c0_19, %c0_20] : memref<32x80xf32, #tpu.memory_space<vmem>>, vector<32x80xf32>
    %cst_21 = arith.constant dense<0.000000e+00> : vector<4x80xf32>
    %47 = tpu.matmul %0, %46, %cst_21 {dimension_numbers = #tpu.dot_dimension_numbers<[1], [0], [0], [1], [0, 0, 1, 1], [], []>} : vector<4x32xf32>, vector<32x80xf32>, vector<4x80xf32> -> vector<4x80xf32>
    %c0_22 = arith.constant 0 : index
    %c0_23 = arith.constant 0 : index
    %48 = vector.load %arg7[%c0_22, %c0_23] : memref<48x80xf32, #tpu.memory_space<vmem>>, vector<48x80xf32>
    %cst_24 = arith.constant dense<0.000000e+00> : vector<4x80xf32>
    %49 = tpu.matmul %1, %48, %cst_24 {dimension_numbers = #tpu.dot_dimension_numbers<[1], [0], [0], [1], [0, 0, 1, 1], [], []>} : vector<4x48xf32>, vector<48x80xf32>, vector<4x80xf32> -> vector<4x80xf32>
    %50 = arith.addf %47, %49 : vector<4x80xf32>
    %51 = arith.mulf %50, %45 : vector<4x80xf32>
    %c0_25 = arith.constant 0 : index
    %c0_26 = arith.constant 0 : index
    %52 = vector.load %arg8[%c0_25, %c0_26] : memref<4x80xf32, #tpu.memory_space<vmem>>, vector<4x80xf32>
    tpu.vector_store %arg8[%c0_25, %c0_26], %51 {strides = array<i32>} : memref<4x80xf32, #tpu.memory_space<vmem>>, vector<4x80xf32>,
    return
  }
  func.func @transform_0(%arg0: i32) -> (i32, i32) {
    %c0_i32 = arith.constant 0 : i32
    %c0_i32_0 = arith.constant 0 : i32
    return %arg0, %c0_i32 : i32, i32
  }
  func.func @transform_1(%arg0: i32) -> (i32, i32) {
    %c0_i32 = arith.constant 0 : i32
    %c0_i32_0 = arith.constant 0 : i32
    return %arg0, %c0_i32 : i32, i32
  }
  func.func @transform_2(%arg0: i32) -> (i32, i32) {
    %c0_i32 = arith.constant 0 : i32
    %c0_i32_0 = arith.constant 0 : i32
    %c0_i32_1 = arith.constant 0 : i32
    return %c0_i32, %c0_i32_0 : i32, i32
  }
  func.func @transform_3(%arg0: i32) -> (i32, i32) {
    %c0_i32 = arith.constant 0 : i32
    %c0_i32_0 = arith.constant 0 : i32
    %c0_i32_1 = arith.constant 0 : i32
    return %c0_i32, %c0_i32_0 : i32, i32
  }
  func.func @transform_4(%arg0: i32) -> (i32, i32) {
    %c0_i32 = arith.constant 0 : i32
    %c0_i32_0 = arith.constant 0 : i32
    %c0_i32_1 = arith.constant 0 : i32
    return %c0_i32, %c0_i32_0 : i32, i32
  }
  func.func @transform_5(%arg0: i32) -> (i32, i32) {
    %c0_i32 = arith.constant 0 : i32
    %c0_i32_0 = arith.constant 0 : i32
    %c0_i32_1 = arith.constant 0 : i32
    return %c0_i32, %c0_i32_0 : i32, i32
  }
  func.func @transform_6(%arg0: i32) -> (i32, i32) {
    %c0_i32 = arith.constant 0 : i32
    %c0_i32_0 = arith.constant 0 : i32
    %c0_i32_1 = arith.constant 0 : i32
    return %c0_i32, %c0_i32_0 : i32, i32
  }
  func.func @transform_7(%arg0: i32) -> (i32, i32) {
    %c0_i32 = arith.constant 0 : i32
    %c0_i32_0 = arith.constant 0 : i32
    return %arg0, %c0_i32 : i32, i32
  }
}

</mosaic_0001>

<bundles_post_ra>
// kernel: tpu_custom_call.1
= control target key start
LH: loop header
LB: loop body
LE: loop exit
PB: predicated region body
PF: predicated region fallthrough
CT: control target
= control target key end

     0   :  { %12 = vsyncpa [#allocation3], 0  ;;  %s604_s0 = inlined_call_operand.hbm [shape: f32[4,32], index: 0, kind: input, shape index: {}]   ;;  %s605_s1 = inlined_call_operand.hbm [shape: f32[4,48], index: 1, kind: input, shape index: {}]   ;;  %s606_s2 = inlined_call_operand.hbm [shape: f32[32,80], index: 2, kind: input, shape index: {}]   ;;  %s607_s3 = inlined_call_operand.hbm [shape: f32[48,80], index: 3, kind: input, shape index: {}]   ;;  %s608_s4 = inlined_call_operand.vmem [shape: f32[1,80], index: 4, kind: input, shape index: {}]   ;;  %s609_s5 = inlined_call_operand.hbm [shape: f32[32,80], index: 5, kind: input, shape index: {}]   ;;  %s610_s6 = inlined_call_operand.hbm [shape: f32[48,80], index: 6, kind: input, shape index: {}]   ;;  %s611_s7 = inlined_call_operand.hbm [shape: f32[4,80], index: 7, kind: output, shape index: {}]  }
   0x1   :  { %13 = vsyncpa [#allocation6], 0 }
   0x2   :  { %14 = vsyncpa [#allocation9], 0 }
   0x3   :  { %15 = vsyncpa [#allocation12], 0  ;;  %s33_s26 = sshll.u32 %s605_s1, 4  ;;  %s34_s26 = int_to_ptr.hbm [resolvable:$true] %s33_s26 }
   0x4   :  { %16 = vsyncpa [#allocation4], 0  ;;  %s507_s27 = smov [#allocation5]   ;;  %s56_s8 = sshll.u32 %s607_s3, 4  ;;  %s57_s8 = int_to_ptr.hbm [resolvable:$true] %s56_s8 }
   0x5   :  { %s35_s28 = sshll.u32 %s507_s27, 4  ;;  %s508_s9 = smov [#allocation8]   ;;  %s36_s28 = int_to_ptr.vmem [resolvable:$true] %s35_s28 }
   0x6   :  { %38 = dma.hbm_to_vmem [thread:$0]  %s34_s26, 64, %s36_s28, [#allocation6]  }
   0x7   :  { %s58_s10 = sshll.u32 %s508_s9, 4  ;;  %s22_s13 = sshll.u32 %s604_s0, 4  ;;  %s59_s10 = int_to_ptr.vmem [resolvable:$true] %s58_s10  ;;  %s23_s13 = int_to_ptr.hbm [resolvable:$true] %s22_s13 }
   0x8   :  { %s509_s1 = smov 128   ;;  %s510_s14 = smov 8  }
   0x9   :  { %64 = dma.hbm_to_vmem [thread:$0]  %s57_s8, 768, %s59_s10, [#allocation9], %s509_s1, %s509_s1, %s510_s14  }
   0xa   :  { %s43_s17 = sshll.u32 %s606_s2, 4  ;;  %s511_s18 = smov [#allocation2]   ;;  %s44_s17 = int_to_ptr.hbm [resolvable:$true] %s43_s17 }
   0xb   :  { %s24_s19 = sshll.u32 %s511_s18, 4  ;;  %s512_s3 = smov [#allocation7]   ;;  %s25_s19 = int_to_ptr.vmem [resolvable:$true] %s24_s19 }
   0xc   :  { %27 = dma.hbm_to_vmem [thread:$0]  %s23_s13, 64, %s25_s19, [#allocation3]  }
   0xd   :  { %s45_s20 = sshll.u32 %s512_s3, 4  ;;  %s71_s0 = sshll.u32 %s609_s5, 4  ;;  %s46_s20 = int_to_ptr.vmem [resolvable:$true] %s45_s20  ;;  %s72_s0 = int_to_ptr.hbm [resolvable:$true] %s71_s0 }
   0xe   :  { %51 = dma.hbm_to_vmem [thread:$0]  %s44_s17, 512, %s46_s20, [#allocation6], %s509_s1, %s509_s1, %s510_s14  }
   0xf   :  { %s84_s25 = sshll.u32 %s610_s6, 4  ;;  %s513_s26 = smov [#allocation10]   ;;  %s85_s25 = int_to_ptr.hbm [resolvable:$true] %s84_s25 }
  0x10   :  { %s73_s2 = sshll.u32 %s513_s26, 4  ;;  %s514_s27 = smov [#allocation11]   ;;  %s74_s2 = int_to_ptr.vmem [resolvable:$true] %s73_s2 }
  0x11   :  { %79 = dma.hbm_to_vmem [thread:$0]  %s72_s0, 512, %s74_s2, [#allocation9], %s509_s1, %s509_s1, %s510_s14  }
  0x12   :  { %s86_s28 = sshll.u32 %s514_s27, 4  ;;  %s87_s28 = int_to_ptr.vmem [resolvable:$true] %s86_s28 }
  0x13   :  { %92 = dma.hbm_to_vmem [thread:$0]  %s85_s25, 768, %s87_s28, [#allocation12], %s509_s1, %s509_s1, %s510_s14  }
  0x14   :  { %497 = dma.done.wait [#allocation3], 64  }
  0x15   :  { %498 = vsyncadd [#allocation3], 4294967232 }
  0x16   :  { %499 = dma.done.wait [#allocation6], 576  }
  0x17   :  { %500 = vsyncadd [#allocation6], 4294966720 }
  0x18   :  { %501 = dma.done.wait [#allocation9], 1280  }
  0x19   :  { %502 = vsyncadd [#allocation9], 4294966016 }
  0x1a   :  { %503 = dma.done.wait [#allocation12], 768  }
  0x1b   :  { %504 = vsyncadd [#allocation12], 4294966528  ;;  %v128_v0 = vld [vmem:[#allocation8 + $0x28] sm:$0xff]  ;;  %v127_v1 = vld [vmem:[#allocation8 + $0x20] sm:$0xff]  ;;  %vm153_vm0 = vcmask 261120   ;;  %vm129_vm1 = vcmask 392192   ;;  %v183_v12 = vlaneseq }
  0x1c   :  { %143 = vmatpush.msra.mxu0 %v128_v0  ;;  %v122_v2 = vld [vmem:[#allocation7 + $0x18] sm:$0xff]  ;;  %v121_v3 = vld [vmem:[#allocation7 + $0x10] sm:$0xff]  ;;  %v120_v5 = vld [vmem:[#allocation7 + $0x8] sm:$0xff]  ;;  %vm187_vm3 = vcmask 650240   ;;  %s296_s9 = sshll.u32 %s611_s7, 4  ;;  %s297_s9 = int_to_ptr.hbm [resolvable:$true] %s296_s9 }
  0x1d   :  { %v126_v4 = vld [vmem:[#allocation8 + $0x18] sm:$0xff]  ;;  %169 = vmatpush.msra.mxu1 %v122_v2  ;;  %v125_v6 = vld [vmem:[#allocation8 + $0x10] sm:$0xff]  ;;  %v119_v7 = vld [vmem:[#allocation7] sm:$0xff]  ;;  %v579_v16 = vand.u32 127, %v183_v12 }
  0x1e   :  { %144 = vmatpush.msra.mxu0 %v127_v1  ;;  %v124_v8 = vld [vmem:[#allocation8 + $0x8] sm:$0xff]  ;;  %v117_v9 = vld [vmem:[#allocation2] sm:$0xf]  ;;  %v123_v10 = vld [vmem:[#allocation8] sm:$0xff] }
  0x1f   :  { %170 = vmatpush.msra.mxu1 %v121_v3  ;;  %v118_v11 = vld [vmem:[#allocation5] sm:$0xf]  ;;  %v322_v14 = vld [vmem:[%s608_s4] ss:$0 sm:$0xff]  ;;  %vm185_vm2 = vcmp.lt.s32.totalorder %v579_v16, 32  ;;  %v245_v25 = vld [vmem:[#allocation11 + $0x20] sm:$0xff] }
  0x20   :  { %145 = vmatpush.msra.mxu0 %v126_v4  ;;  %v246_v24 = vld [vmem:[#allocation11 + $0x28] sm:$0xff]  ;;  %v244_v26 = vld [vmem:[#allocation11 + $0x18] sm:$0xff]  ;;  %v239_v28 = vld [vmem:[#allocation10 + $0x10] sm:$0xff]  ;;  %s515_s4 = smov [#allocation13]  }
  0x21   :  { %171 = vmatpush.msra.mxu1 %v120_v5  ;;  %257 = vmatpush.msra.mxu2 %v246_v24  ;;  %v240_v27 = vld [vmem:[#allocation10 + $0x18] sm:$0xff]  ;;  %v243_v29 = vld [vmem:[#allocation11 + $0x10] sm:$0xff]  ;;  %v238_v30 = vld [vmem:[#allocation10 + $0x8] sm:$0xff]  ;;  %s294_s29 = sshll.u32 %s515_s4, 4  ;;  %s295_s29 = int_to_ptr.vmem [resolvable:$true] %s294_s29 }
  0x22   :  { %146 = vmatpush.msra.mxu0 %v125_v6  ;;  %279 = vmatpush.msra.mxu3 %v240_v27  ;;  %v242_v31 = vld [vmem:[#allocation11 + $0x8] sm:$0xff]  ;;  %v241_v32 = vld [vmem:[#allocation11] sm:$0xff] }
  0x23   :  { %172 = vmatpush.msra.mxu1 %v119_v7  ;;  %258 = vmatpush.msra.mxu2 %v245_v25  ;;  %v237_v33 = vld [vmem:[#allocation10] sm:$0xff] }
  0x24   :  { %147 = vmatpush.msra.mxu0 %v124_v8  ;;  %310 = vmatmul.msk.f32.vlgmr.msra.gmra.mxu1 %vm153_vm0, %v117_v9 }
  0x25   :  { %259 = vmatpush.msra.mxu2 %v244_v26  ;;  %280 = vmatpush.msra.mxu3 %v239_v28 }
  0x26   :  { %148 = vmatpush.msra.mxu0 %v123_v10 }
  0x27   :  { %309 = vmatmul.msk.f32.vlgmr.msra.gmra.mxu0 %vm129_vm1, %v118_v11  ;;  %260 = vmatpush.msra.mxu2 %v243_v29 }
  0x28   :  { %281 = vmatpush.msra.mxu3 %v238_v30 }
  0x29   :  { %261 = vmatpush.msra.mxu2 %v242_v31 }
  0x2a   :  { %282 = vmatpush.msra.mxu3 %v237_v33 }
  0x2b   :  { %262 = vmatpush.msra.mxu2 %v241_v32  ;;  %312 = vmatmul.msk.f32.vlgmr.msra.gmra.mxu3 %vm153_vm0, %v117_v9 }
  0x2c   :  { %311 = vmatmul.msk.f32.vlgmr.msra.gmra.mxu2 %vm129_vm1, %v118_v11 }
  0xa1   :  { %v174_v13 = vpop.f32.mrf.mxu1 }
  0xa4   :  { %v150_v15 = vpop.f32.mrf.mxu0 }
  0xa5   :  { %v175_v17 = vadd.f32 %v174_v13, %v150_v15 }
  0xa7   :  { %v181_v18 = vadd.f32 %v322_v14, %v175_v17 }
  0xa9   :  { %v182_v19 = vmul.f32 1.25, %v181_v18 }
  0xab   :  { %v186_v20 = vsel %vm185_vm2, %v182_v19, -1e+30  ;;  %v191_v22 = vsel %vm185_vm2, -1e+30, %v182_v19 }
  0xac   :  { %v188_v21 = vsel %vm187_vm3, %v186_v20, -inf  ;;  %v192_v23 = vsel %vm187_vm3, %v191_v22, -inf }
  0xad   :  { %189 = vmax.xlane.f32.xlu0 %v188_v21 }
  0xae   :  { %v284_v62 = vpop.f32.mrf.mxu3 }
  0xaf   :  { %v264_v60 = vpop.f32.mrf.mxu2 }
  0xb0   :  { %v285_v4 = vadd.f32 %v284_v62, %v264_v60 }
  0xb5   :  { %193 = vmax.xlane.f32.xlu0 %v192_v23 }
 0x120   :  { %v190_v34 = vpop.xlane.xlu0 %189 }
 0x128   :  { %v194_v35 = vpop.xlane.xlu0 %193 }
 0x129   :  { %v195_v36 = vsel %vm185_vm2, %v190_v34, %v194_v35 }
 0x12a   :  { %v196_v37 = vsub.f32 %v182_v19, %v195_v36 }
 0x12c   :  { %v197_v38 = vmul.f32 1.442695, %v196_v37 }
 0x12e   :  { %323 = vpow2.f32 %v197_v38 }
 0x134   :  { %v324_v39 = vpop.eup %323 }
 0x135   :  { %v199_v40 = vsel %vm185_vm2, %v324_v39, 0.0  ;;  %v203_v42 = vsel %vm185_vm2, 0.0, %v324_v39 }
 0x136   :  { %v200_v41 = vsel %vm187_vm3, %v199_v40, 0.0  ;;  %v204_v43 = vsel %vm187_vm3, %v203_v42, 0.0 }
 0x137   :  { %201 = vadd.xlane.f32.xlu1 %v200_v41 }
 0x13f   :  { %205 = vadd.xlane.f32.xlu1 %v204_v43 }
 0x1aa   :  { %v202_v44 = vpop.xlane.xlu1 %201 }
 0x1ab   :  { %325 = vrcp.f32 %v202_v44  ;;  %vm212_vm5 = vweird.f32 %v202_v44  ;;  %v218_v54 = vand.u32 2147483648, %v202_v44  ;;  %v216_v56 = vand.u32 2147483647, %v202_v44 }
 0x1ad   :  { %v219_v63 = vor.u32 1.1754944e-38, %v218_v54  ;;  %vm217_vm10 = vcmp.eq.f32.partialorder %v216_v56, 8.507059e+37 }
 0x1b1   :  { %v326_v45 = vpop.eup %325 }
 0x1b2   :  { %v208_v46 = vmul.f32 %v326_v45, %v202_v44  ;;  %v206_v47 = vpop.xlane.xlu1 %205  ;;  %vm213_vm4 = vweird.f32 %v326_v45 }
 0x1b3   :  { %327 = vrcp.f32 %v206_v47  ;;  %v232_v55 = vand.u32 2147483648, %v206_v47  ;;  %v230_v58 = vand.u32 2147483647, %v206_v47  ;;  %vm214_vm7 = vmor %vm212_vm5, %vm213_vm4  ;;  %vm226_vm8 = vweird.f32 %v206_v47 }
 0x1b4   :  { %v209_v48 = vsub.f32 1.0, %v208_v46 }
 0x1b5   :  { %v233_v0 = vor.u32 1.1754944e-38, %v232_v55  ;;  %vm231_vm11 = vcmp.eq.f32.partialorder %v230_v58, 8.507059e+37 }
 0x1b6   :  { %v210_v49 = vmul.f32 %v326_v45, %v209_v48 }
 0x1b8   :  { %v211_v52 = vadd.f32 %v326_v45, %v210_v49 }
 0x1b9   :  { %v328_v50 = vpop.eup %327 }
 0x1ba   :  { %v222_v51 = vmul.f32 %v328_v50, %v206_v47  ;;  %vm227_vm6 = vweird.f32 %v328_v50  ;;  %v215_v61 = vsel %vm214_vm7, %v326_v45, %v211_v52 }
 0x1bb   :  { %vm228_vm9 = vmor %vm226_vm8, %vm227_vm6  ;;  %v220_v2 = vsel %vm217_vm10, %v219_v63, %v215_v61 }
 0x1bc   :  { %v223_v53 = vsub.f32 1.0, %v222_v51 }
 0x1be   :  { %v224_v57 = vmul.f32 %v328_v50, %v223_v53 }
 0x1c0   :  { %v225_v59 = vadd.f32 %v328_v50, %v224_v57 }
 0x1c2   :  { %v229_v1 = vsel %vm228_vm9, %v328_v50, %v225_v59 }
 0x1c3   :  { %v234_v3 = vsel %vm231_vm11, %v233_v0, %v229_v1 }
 0x1c4   :  { %v235_v5 = vsel %vm185_vm2, %v220_v2, %v234_v3 }
 0x1c5   :  { %v236_v6 = vmul.f32 %v324_v39, %v235_v5 }
 0x1c7   :  { %v287_v7 = vmul.f32 %v285_v4, %v236_v6 }
 0x1c9   :  { %288 = vst.msk [vmem:[#allocation13] sm:$0xf] %vm187_vm3, %v287_v7 }
 0x1ca   :  { %299 = dma.vmem_to_hbm [thread:$0]  %s295_s29, 64, %s297_s9, [#allocation4]  }
 0x1cb   :  { %505 = dma.done.wait [#allocation4], 64  }
 0x1cc   :  { %506 = vsyncadd [#allocation4], 4294967232 }
 0x1cd   :  { %304 = vsyncpa [#allocation3], 1 }
 0x1ce   :  { %305 = vsyncpa [#allocation6], 1 }
 0x1cf   :  { %306 = vsyncpa [#allocation9], 1 }
 0x1d0   :  { %307 = vsyncpa [#allocation12], 1 }
 0x1d1   :  { %308 = vsyncpa [#allocation4], 1 }

</bundles_post_ra>
